<compile_context>
chip_gen: v5e
topology: v5e:2x2
jax: 0.10.0
libtpu: 0.0.40
codegen_flags: <defaults>
</compile_context>

<pallas_src>
import jax
import jax.numpy as jnp
from jax.experimental import pallas as pl
from jax.experimental.pallas import tpu as pltpu

_NEG_BIG = -1e30  # "minus infinity" for masked softmax lanes (finite: avoids inf-arith edge cases)


def _selector_kernel(tgt_ref, slab_ref, out_ref):
    """tgt_ref: (Bt, D) batch tile.  slab_ref: (3D+8, 2D) packed invariants.
    out_ref: (Bt, 2D) = [final_context | context_weights (padded)]."""
    D = tgt_ref.shape[-1]

    # ---- static views into the packed slab --------------------------------
    wq       = slab_ref[0:D,         0:D]        # (D, D)   query projection
    wa_eff   = slab_ref[0:D,         D:2 * D]    # (D, D)   context-attention weight (folded, padded)
    wo_top   = slab_ref[D:2 * D,     0:D]        # (D, D)   output proj, card_ctx half
    ctx_wo   = slab_ref[D:2 * D,     D:2 * D]    # (D, D)   ctx_emb @ wo_bot (padded rows = 0)
    keys_t   = slab_ref[2 * D:3 * D, 0:D]        # (D, D)   keys^T, padded cols = 0
    vals     = slab_ref[2 * D:3 * D, D:2 * D]    # (D, D)   values, padded rows = 0
    bq       = slab_ref[3 * D:3 * D + 1,     0:D]        # (1, D)
    const_a  = slab_ref[3 * D:3 * D + 1,     D:2 * D]    # (1, D) attn bias (+question fold, pad = -1e30)
    bo       = slab_ref[3 * D + 1:3 * D + 2, 0:D]        # (1, D)
    key_mask = slab_ref[3 * D + 1:3 * D + 2, D:2 * D]    # (1, D) 0 real / -1e30 padded key cols

    x = tgt_ref[...]                                                         # (Bt, D)

    # ---- scaled dot-product attention over the other cards ----------------
    q = jnp.dot(x, wq, preferred_element_type=jnp.float32) + bq              # (Bt, D)
    scores = jnp.dot(q, keys_t, preferred_element_type=jnp.float32) * (D ** -0.5) + key_mask
    scores = scores - jnp.max(scores, axis=-1, keepdims=True)
    p = jnp.exp(scores)
    attn = p * pl.reciprocal(jnp.sum(p, axis=-1, keepdims=True), approx=True)
    card_ctx = jnp.dot(attn, vals, preferred_element_type=jnp.float32)       # (Bt, D)

    # ---- context preference softmax (question / self term pre-folded) -----
    logits = jnp.dot(card_ctx, wa_eff, preferred_element_type=jnp.float32) + const_a
    logits = logits - jnp.max(logits, axis=-1, keepdims=True)
    e = jnp.exp(logits)
    cw = e / jnp.sum(e, axis=-1, keepdims=True)   # exact: returned as probabilities

    # ---- output projection (concat folded: wo split into two matmuls) -----
    final = (jnp.dot(card_ctx, wo_top, preferred_element_type=jnp.float32)
             + jnp.dot(cw, ctx_wo, preferred_element_type=jnp.float32) + bo)

    # ---- single unmasked lane-dense store ----------------------------------
    out_ref[...] = jnp.concatenate([final, cw], axis=-1)


def _round_up(x, m):
    return ((x + m - 1) // m) * m


def make_params(key, embedding_dim=64, num_contexts=12):
    D, C = embedding_dim, num_contexts
    ks = jax.random.split(key, 11)
    s = 0.1  # small deterministic init for the linear layers
    return {
        "wq": jax.random.normal(ks[0], (D, D), jnp.float32) * s,
        "bq": jax.random.normal(ks[1], (1, D), jnp.float32) * s,
        "wk": jax.random.normal(ks[2], (D, D), jnp.float32) * s,
        "bk": jax.random.normal(ks[3], (1, D), jnp.float32) * s,
        "wv": jax.random.normal(ks[4], (D, D), jnp.float32) * s,
        "bv": jax.random.normal(ks[5], (1, D), jnp.float32) * s,
        "wa": jax.random.normal(ks[6], (2 * D, C), jnp.float32) * s,
        "ba": jax.random.normal(ks[7], (1, C), jnp.float32) * s,
        "ctx_emb": jax.random.normal(ks[8], (C, D), jnp.float32),  # torch.randn
        "wo": jax.random.normal(ks[9], (2 * D, D), jnp.float32) * s,
        "bo": jax.random.normal(ks[10], (1, D), jnp.float32) * s,
    }


@jax.jit
def enhanced_context_selector_batched(target_embs, other_embs, params, question_emb=None):
    """B independent forward passes (same other-card set / question for every row).

    Returns (final_context [B, D], context_weights [B, C])."""
    f32 = jnp.float32
    B, D = target_embs.shape
    N = other_embs.shape[0]
    C = params["ctx_emb"].shape[0]
    # TODO(synk): empty-other-cards fallback (`if keys:` false) is not lowered here.
    assert N >= 1
    assert N <= D, "key/value rows are packed into a D-wide padded block"
    assert C <= D, "context weights are packed into the D-wide second output half"

    # ---- batch-invariant precompute (tiny XLA ops, hoisted out of the kernel) ----
    others = other_embs.astype(f32)
    keys = others @ params["wk"].astype(f32) + params["bk"].astype(f32)        # (N, D)
    vals = others @ params["wv"].astype(f32) + params["bv"].astype(f32)        # (N, D)
    keys_t_pad = jnp.zeros((D, D), f32).at[:, :N].set(keys.T)
    vals_pad = jnp.zeros((D, D), f32).at[:N, :].set(vals)
    key_mask = jnp.full((D,), _NEG_BIG, f32).at[:N].set(0.0)

    wa = params["wa"].astype(f32)                         # (2D, C)
    ba = params["ba"].reshape(-1).astype(f32)             # (C,)
    if question_emb is not None:
        wa_eff = wa[:D]                                   # combined = [card_ctx, qemb]
        const_a = (question_emb.reshape(1, D).astype(f32) @ wa[D:]).reshape(-1) + ba
    else:
        wa_eff = wa[:D] + wa[D:]                          # combined = [card_ctx, card_ctx]
        const_a = ba
    wa_eff_pad = jnp.zeros((D, D), f32).at[:, :C].set(wa_eff)
    const_a_pad = jnp.full((D,), _NEG_BIG, f32).at[:C].set(const_a)   # pad lanes -> softmax 0

    wo = params["wo"].astype(f32)                          # (2D, D)
    wo_top = wo[:D]
    ctx_wo = params["ctx_emb"].astype(f32) @ wo[D:]        # (C, D): concat fold
    ctx_wo_pad = jnp.zeros((D, D), f32).at[:C, :].set(ctx_wo)

    wq = params["wq"].astype(f32)
    bq = params["bq"].reshape(-1).astype(f32)
    bo = params["bo"].reshape(-1).astype(f32)

    # ---- one lane-dense (3D+8, 2D) slab holds every grid-invariant operand ----
    rows = 3 * D + 8
    slab = jnp.zeros((rows, 2 * D), f32)
    slab = slab.at[0:D, 0:D].set(wq)
    slab = slab.at[0:D, D:2 * D].set(wa_eff_pad)
    slab = slab.at[D:2 * D, 0:D].set(wo_top)
    slab = slab.at[D:2 * D, D:2 * D].set(ctx_wo_pad)
    slab = slab.at[2 * D:3 * D, 0:D].set(keys_t_pad)
    slab = slab.at[2 * D:3 * D, D:2 * D].set(vals_pad)
    slab = slab.at[3 * D, 0:D].set(bq)
    slab = slab.at[3 * D, D:2 * D].set(const_a_pad)
    slab = slab.at[3 * D + 1, 0:D].set(bo)
    slab = slab.at[3 * D + 1, D:2 * D].set(key_mask)

    # ---- batch tiling: big tiles; >=2 (even) parallel steps when B is large ----
    b8 = _round_up(B, 8)
    if b8 <= 512:
        bt = b8                                   # single step; launch-overhead regime
    else:
        n_steps = 2 * pl.cdiv(b8, 2048)           # even #steps of <=1024 rows (v7x: 2 TCs)
        bt = _round_up(pl.cdiv(b8, n_steps), 8)
    grid_n = pl.cdiv(b8, bt)
    b_pad = grid_n * bt
    tgt = jnp.zeros((b_pad, D), f32).at[:B].set(target_embs.astype(f32))

    out = pl.pallas_call(
        _selector_kernel,
        out_shape=jax.ShapeDtypeStruct((b_pad, 2 * D), f32),
        grid=(grid_n,),
        in_specs=[pl.BlockSpec((bt, D), lambda i: (i, 0)),
                  pl.BlockSpec((rows, 2 * D), lambda i: (0, 0))],
        out_specs=pl.BlockSpec((bt, 2 * D), lambda i: (i, 0)),
        compiler_params=pltpu.CompilerParams(dimension_semantics=("parallel",)),
    )(tgt, slab)

    return out[:B, :D], out[:B, D:D + C]


def enhanced_context_selector(target_emb, other_embs, params, question_emb=None):
    """Single-target forward matching EnhancedContextSelector.forward.

    Returns (final_context [D], context_weights [C])."""
    final, cw = enhanced_context_selector_batched(
        target_emb.reshape(1, -1), other_embs, params, question_emb)
    return final[0], cw[0]


def _reference_forward(target_emb, other_embs, params, question_emb=None):
    """Pure-JAX reference of the PyTorch forward (same [in, out] weight layout)."""
    with jax.default_matmul_precision("highest"):
        D = target_emb.shape[-1]
        q = target_emb.reshape(1, D) @ params["wq"] + params["bq"]
        keys = other_embs @ params["wk"] + params["bk"]
        vals = other_embs @ params["wv"] + params["bv"]
        attn = jax.nn.softmax((q @ keys.T) * (D ** -0.5), axis=-1)
        card_ctx = attn @ vals
        second = question_emb.reshape(1, D) if question_emb is not None else card_ctx
        combined = jnp.concatenate([card_ctx, second], axis=-1)
        cw = jax.nn.softmax(combined @ params["wa"] + params["ba"], axis=-1)
        weighted = cw @ params["ctx_emb"]
        final = jnp.concatenate([card_ctx, weighted], axis=-1) @ params["wo"] + params["bo"]
        return final[0], cw[0]


if __name__ == "__main__":
    embedding_dim = 64
    num_contexts = 12
    n_cards = 5  # target + 4 other cards in the reading

    key = jax.random.PRNGKey(0)
    k_params, k_emb, k_q = jax.random.split(key, 3)

    params = make_params(k_params, embedding_dim, num_contexts)
    card_embs = jax.random.normal(k_emb, (n_cards, embedding_dim), jnp.float32)
    question_emb = jax.random.normal(k_q, (embedding_dim,), jnp.float32)

    # ---- single forward with question (matches the PyTorch module) --------
    final_context, context_weights = enhanced_context_selector(
        card_embs[0], card_embs[1:], params, question_emb)
    jax.block_until_ready((final_context, context_weights))
    assert final_context.shape == (embedding_dim,)
    assert context_weights.shape == (num_contexts,)

    ref_final, ref_cw = _reference_forward(card_embs[0], card_embs[1:], params, question_emb)
    assert jnp.allclose(final_context, ref_final, rtol=5e-2, atol=5e-2)
    assert jnp.allclose(context_weights, ref_cw, rtol=5e-2, atol=5e-2)
    # returned context_weights are an exact softmax (probability distribution)
    assert jnp.allclose(jnp.sum(context_weights), 1.0, atol=1e-5)

    # ---- batched, no question: B independent forwards in one kernel launch -
    targets = jnp.tile(card_embs, (2, 1))  # small demo batch, B = 10
    finals, cws = enhanced_context_selector_batched(targets, card_embs[1:], params, None)
    jax.block_until_ready((finals, cws))
    assert finals.shape == (10, embedding_dim)
    assert cws.shape == (10, num_contexts)

    ref_final0, ref_cw0 = _reference_forward(card_embs[0], card_embs[1:], params, None)
    assert jnp.allclose(finals[0], ref_final0, rtol=5e-2, atol=5e-2)
    assert jnp.allclose(cws[0], ref_cw0, rtol=5e-2, atol=5e-2)

    print("KERNEL_OK")
</pallas_src>

<mosaic_0001>
module attributes {stable_mosaic.version = 11 : i64} {
  func.func @_selector_kernel(%arg0: i32, %arg1: memref<8x64xf32, #tpu.memory_space<vmem>>, %arg2: memref<200x128xf32, #tpu.memory_space<vmem>>, %arg3: memref<8x128xf32, #tpu.memory_space<vmem>>) attributes {dimension_semantics = [#tpu.dimension_semantics<parallel>], iteration_bounds = array<i64: 1>, scalar_prefetch = 0 : i64, scratch_operands = 0 : i64, tpu.core_type = #tpu.core_type<tc>, window_params = [{transform_indices = @transform_0, window_bounds = array<i64: 8, 64>}, {pipeline_mode = #tpu.pipeline_mode<synchronous>, transform_indices = @transform_1, window_bounds = array<i64: 200, 128>}, {transform_indices = @transform_2, window_bounds = array<i64: 8, 128>}]} {
    %c0 = arith.constant 0 : index
    %c0_0 = arith.constant 0 : index
    %0 = vector.load %arg2[%c0, %c0_0] : memref<200x128xf32, #tpu.memory_space<vmem>>, vector<64x64xf32>
    %c0_1 = arith.constant 0 : index
    %c64 = arith.constant 64 : index
    %1 = vector.load %arg2[%c0_1, %c64] : memref<200x128xf32, #tpu.memory_space<vmem>>, vector<64x64xf32>
    %c64_2 = arith.constant 64 : index
    %c0_3 = arith.constant 0 : index
    %2 = vector.load %arg2[%c64_2, %c0_3] : memref<200x128xf32, #tpu.memory_space<vmem>>, vector<64x64xf32>
    %c64_4 = arith.constant 64 : index
    %c64_5 = arith.constant 64 : index
    %3 = vector.load %arg2[%c64_4, %c64_5] : memref<200x128xf32, #tpu.memory_space<vmem>>, vector<64x64xf32>
    %c128 = arith.constant 128 : index
    %c0_6 = arith.constant 0 : index
    %4 = vector.load %arg2[%c128, %c0_6] : memref<200x128xf32, #tpu.memory_space<vmem>>, vector<64x64xf32>
    %c128_7 = arith.constant 128 : index
    %c64_8 = arith.constant 64 : index
    %5 = vector.load %arg2[%c128_7, %c64_8] : memref<200x128xf32, #tpu.memory_space<vmem>>, vector<64x64xf32>
    %c192 = arith.constant 192 : index
    %c0_9 = arith.constant 0 : index
    %6 = vector.load %arg2[%c192, %c0_9] : memref<200x128xf32, #tpu.memory_space<vmem>>, vector<1x64xf32>
    %c192_10 = arith.constant 192 : index
    %c64_11 = arith.constant 64 : index
    %7 = vector.load %arg2[%c192_10, %c64_11] : memref<200x128xf32, #tpu.memory_space<vmem>>, vector<1x64xf32>
    %c193 = arith.constant 193 : index
    %c0_12 = arith.constant 0 : index
    %8 = vector.load %arg2[%c193, %c0_12] : memref<200x128xf32, #tpu.memory_space<vmem>>, vector<1x64xf32>
    %c193_13 = arith.constant 193 : index
    %c64_14 = arith.constant 64 : index
    %9 = vector.load %arg2[%c193_13, %c64_14] : memref<200x128xf32, #tpu.memory_space<vmem>>, vector<1x64xf32>
    %c0_15 = arith.constant 0 : index
    %c0_16 = arith.constant 0 : index
    %10 = vector.load %arg1[%c0_15, %c0_16] : memref<8x64xf32, #tpu.memory_space<vmem>>, vector<8x64xf32>
    %cst = arith.constant dense<0.000000e+00> : vector<8x64xf32>
    %11 = tpu.matmul %10, %0, %cst {dimension_numbers = #tpu.dot_dimension_numbers<[1], [0], [0], [1], [0, 0, 1, 1], [], []>} : vector<8x64xf32>, vector<64x64xf32>, vector<8x64xf32> -> vector<8x64xf32>
    %12 = vector.broadcast %6 : vector<1x64xf32> to vector<8x64xf32>
    %13 = arith.addf %11, %12 : vector<8x64xf32>
    %cst_17 = arith.constant dense<0.000000e+00> : vector<8x64xf32>
    %14 = tpu.matmul %13, %4, %cst_17 {dimension_numbers = #tpu.dot_dimension_numbers<[1], [0], [0], [1], [0, 0, 1, 1], [], []>} : vector<8x64xf32>, vector<64x64xf32>, vector<8x64xf32> -> vector<8x64xf32>
    %cst_18 = arith.constant 1.250000e-01 : f32
    %15 = vector.broadcast %cst_18 : f32 to vector<8x64xf32>
    %16 = arith.mulf %14, %15 : vector<8x64xf32>
    %17 = vector.broadcast %9 : vector<1x64xf32> to vector<8x64xf32>
    %18 = arith.addf %16, %17 : vector<8x64xf32>
    %cst_19 = arith.constant dense<0xFF800000> : vector<8xf32>
    %19 = vector.multi_reduction <maximumf>, %18, %cst_19 [1] : vector<8x64xf32> to vector<8xf32>
    %20 = vector.shape_cast %19 : vector<8xf32> to vector<8x1xf32>
    %21 = vector.broadcast %20 : vector<8x1xf32> to vector<8x64xf32>
    %22 = arith.subf %18, %21 : vector<8x64xf32>
    %23 = math.exp %22 : vector<8x64xf32>
    %cst_20 = arith.constant dense<0.000000e+00> : vector<8xf32>
    %24 = vector.multi_reduction <add>, %23, %cst_20 [1] : vector<8x64xf32> to vector<8xf32>
    %25 = vector.shape_cast %24 : vector<8xf32> to vector<8x1xf32>
    %26 = tpu.reciprocal %25 {approx = true} : vector<8x1xf32> -> vector<8x1xf32>
    %27 = vector.broadcast %26 : vector<8x1xf32> to vector<8x64xf32>
    %28 = arith.mulf %23, %27 : vector<8x64xf32>
    %cst_21 = arith.constant dense<0.000000e+00> : vector<8x64xf32>
    %29 = tpu.matmul %28, %5, %cst_21 {dimension_numbers = #tpu.dot_dimension_numbers<[1], [0], [0], [1], [0, 0, 1, 1], [], []>} : vector<8x64xf32>, vector<64x64xf32>, vector<8x64xf32> -> vector<8x64xf32>
    %cst_22 = arith.constant dense<0.000000e+00> : vector<8x64xf32>
    %30 = tpu.matmul %29, %1, %cst_22 {dimension_numbers = #tpu.dot_dimension_numbers<[1], [0], [0], [1], [0, 0, 1, 1], [], []>} : vector<8x64xf32>, vector<64x64xf32>, vector<8x64xf32> -> vector<8x64xf32>
    %31 = vector.broadcast %7 : vector<1x64xf32> to vector<8x64xf32>
    %32 = arith.addf %30, %31 : vector<8x64xf32>
    %cst_23 = arith.constant dense<0xFF800000> : vector<8xf32>
    %33 = vector.multi_reduction <maximumf>, %32, %cst_23 [1] : vector<8x64xf32> to vector<8xf32>
    %34 = vector.shape_cast %33 : vector<8xf32> to vector<8x1xf32>
    %35 = vector.broadcast %34 : vector<8x1xf32> to vector<8x64xf32>
    %36 = arith.subf %32, %35 : vector<8x64xf32>
    %37 = math.exp %36 : vector<8x64xf32>
    %cst_24 = arith.constant dense<0.000000e+00> : vector<8xf32>
    %38 = vector.multi_reduction <add>, %37, %cst_24 [1] : vector<8x64xf32> to vector<8xf32>
    %39 = vector.shape_cast %38 : vector<8xf32> to vector<8x1xf32>
    %40 = vector.broadcast %39 : vector<8x1xf32> to vector<8x64xf32>
    %41 = arith.divf %37, %40 : vector<8x64xf32>
    %cst_25 = arith.constant dense<0.000000e+00> : vector<8x64xf32>
    %42 = tpu.matmul %29, %2, %cst_25 {dimension_numbers = #tpu.dot_dimension_numbers<[1], [0], [0], [1], [0, 0, 1, 1], [], []>} : vector<8x64xf32>, vector<64x64xf32>, vector<8x64xf32> -> vector<8x64xf32>
    %cst_26 = arith.constant dense<0.000000e+00> : vector<8x64xf32>
    %43 = tpu.matmul %41, %3, %cst_26 {dimension_numbers = #tpu.dot_dimension_numbers<[1], [0], [0], [1], [0, 0, 1, 1], [], []>} : vector<8x64xf32>, vector<64x64xf32>, vector<8x64xf32> -> vector<8x64xf32>
    %44 = arith.addf %42, %43 : vector<8x64xf32>
    %45 = vector.broadcast %8 : vector<1x64xf32> to vector<8x64xf32>
    %46 = arith.addf %44, %45 : vector<8x64xf32>
    %47 = tpu.concatenate %46, %41 in 1 : vector<8x64xf32>, vector<8x64xf32> -> vector<8x128xf32>
    %c0_27 = arith.constant 0 : index
    %c0_28 = arith.constant 0 : index
    %48 = vector.load %arg3[%c0_27, %c0_28] : memref<8x128xf32, #tpu.memory_space<vmem>>, vector<8x128xf32>
    tpu.vector_store %arg3[%c0_27, %c0_28], %47 {strides = array<i32>} : memref<8x128xf32, #tpu.memory_space<vmem>>, vector<8x128xf32>,
    return
  }
  func.func @transform_0(%arg0: i32) -> (i32, i32) {
    %c0_i32 = arith.constant 0 : i32
    %c0_i32_0 = arith.constant 0 : i32
    return %arg0, %c0_i32 : i32, i32
  }
  func.func @transform_1(%arg0: i32) -> (i32, i32) {
    %c0_i32 = arith.constant 0 : i32
    %c0_i32_0 = arith.constant 0 : i32
    %c0_i32_1 = arith.constant 0 : i32
    return %c0_i32, %c0_i32_0 : i32, i32
  }
  func.func @transform_2(%arg0: i32) -> (i32, i32) {
    %c0_i32 = arith.constant 0 : i32
    %c0_i32_0 = arith.constant 0 : i32
    return %arg0, %c0_i32 : i32, i32
  }
}

</mosaic_0001>

<bundles_post_ra>
// kernel: enhanced_context_selector_batched.1
= control target key start
LH: loop header
LB: loop body
LE: loop exit
PB: predicated region body
PF: predicated region fallthrough
CT: control target
= control target key end

     0   :  { %vm39_vm0 = vcmask 523264   ;;  %s546_s1 = inlined_call_operand.vmem [shape: f32[200,128], index: 1, kind: input, shape index: {}]   ;;  %s547_s0 = inlined_call_operand.vmem [shape: f32[8,64], index: 0, kind: input, shape index: {}]   ;;  %s548_s2 = inlined_call_operand.vmem [shape: f32[8,128], index: 2, kind: output, shape index: {}]  }
   0x1   :  { %v18_v0 = vld [vmem:[%s546_s1 + $0x38] sm:$0xff]  ;;  %v17_v1 = vld [vmem:[%s546_s1 + $0x30] sm:$0xff]  ;;  %v429_v2 = vld [vmem:[%s546_s1 + $0x28] sm:$0xff] }
   0x2   :  { %51 = vmatpush.msra.mxu0 %v18_v0  ;;  %v354_v3 = vpack.i.bf16 %v17_v1, %v18_v0  ;;  %v15_v4 = vld [vmem:[%s546_s1 + $0x20] sm:$0xff]  ;;  %v437_v5 = vld [vmem:[%s546_s1 + $0x18] sm:$0xff]  ;;  %v442_v6 = vld [vmem:[%s546_s1 + $0x10] sm:$0xff] }
   0x3   :  { %v359_v7 = vpack.i.bf16 %v15_v4, %v429_v2  ;;  %v364_v8 = vpack.i.bf16 %v442_v6, %v437_v5  ;;  %v12_v9 = vld [vmem:[%s546_s1 + $0x8] sm:$0xff]  ;;  %v11_v10 = vld [vmem:[%s546_s1] sm:$0xff]  ;;  %v34_v12 = vld [vmem:[%s546_s1 + $0xb8] sm:$0xff] }
   0x4   :  { %52 = vmatpush.msra.mxu0 %v17_v1  ;;  %v369_v11 = vpack.i.bf16 %v11_v10, %v12_v9  ;;  %v33_v13 = vld [vmem:[%s546_s1 + $0xb0] sm:$0xff]  ;;  %v32_v14 = vld [vmem:[%s546_s1 + $0xa8] sm:$0xff]  ;;  %74 = vmatpush.msra.mxu1 %v34_v12  ;;  %v31_v15 = vld [vmem:[%s546_s1 + $0xa0] sm:$0xff] }
   0x5   :  { %v30_v16 = vld [vmem:[%s546_s1 + $0x98] sm:$0xff]  ;;  %v29_v17 = vld [vmem:[%s546_s1 + $0x90] sm:$0xff]  ;;  %v339_v18 = vpack.i.bf16 %v31_v15, %v32_v14  ;;  %v37_v20 = vld [vmem:[%s547_s0] sm:$0xff]  ;;  %s404_s0 = smov 64   ;;  %v334_v33 = vpack.i.bf16 %v33_v13, %v34_v12 }
   0x6   :  { %53 = vmatpush.msra.mxu0 %v429_v2  ;;  %v344_v19 = vpack.i.bf16 %v29_v17, %v30_v16  ;;  %75 = vmatpush.msra.mxu1 %v33_v13  ;;  %v28_v21 = vld [vmem:[%s546_s1 + $0x88] sm:$0xff]  ;;  %v27_v22 = vld [vmem:[%s546_s1 + $0x80] sm:$0xff]  ;;  %v26_v46 = vld [vmem:[%s546_s1 + $0x78] sm:$0xff] }
   0x7   :  { %v349_v23 = vpack.i.bf16 %v27_v22, %v28_v21  ;;  %v487_v24 = vld [vmem:[%s546_s1 + $0xc1] ss:$0 sm:$0xff]  ;;  %v394_v25 = vld [vmem:[%s546_s1 + $0xc0] ss:$0 sm:$0xff]  ;;  %335 = vrot.lane.b32.xlu1 %v334_v33, %s404_s0  ;;  %v25_v47 = vld [vmem:[%s546_s1 + $0x70] sm:$0xff] }
   0x8   :  { %54 = vmatpush.msra.mxu0 %v15_v4  ;;  %76 = vmatpush.msra.mxu1 %v32_v14  ;;  %v374_v49 = vpack.i.bf16 %v25_v47, %v26_v46  ;;  %v24_v52 = vld [vmem:[%s546_s1 + $0x68] sm:$0xff]  ;;  %v23_v53 = vld [vmem:[%s546_s1 + $0x60] sm:$0xff]  ;;  %v22_v54 = vld [vmem:[%s546_s1 + $0x58] sm:$0xff] }
   0x9   :  { %89 = vrot.lane.b32.xlu0 %v487_v24, %s404_s0  ;;  %v379_v55 = vpack.i.bf16 %v23_v53, %v24_v52  ;;  %v21_v56 = vld [vmem:[%s546_s1 + $0x50] sm:$0xff]  ;;  %v20_v60 = vld [vmem:[%s546_s1 + $0x48] sm:$0xff]  ;;  %v19_v12 = vld [vmem:[%s546_s1 + $0x40] sm:$0xff] }
   0xa   :  { %55 = vmatpush.msra.mxu0 %v437_v5  ;;  %77 = vmatpush.msra.mxu1 %v31_v15  ;;  %v384_v62 = vpack.i.bf16 %v21_v56, %v22_v54  ;;  %v389_v13 = vpack.i.bf16 %v19_v12, %v20_v60 }
   0xc   :  { %56 = vmatpush.msra.mxu0 %v442_v6  ;;  %78 = vmatpush.msra.mxu1 %v30_v16 }
   0xe   :  { %57 = vmatpush.msra.mxu0 %v12_v9  ;;  %79 = vmatpush.msra.mxu1 %v29_v17 }
   0xf   :  { %340 = vrot.lane.b32.xlu1 %v339_v18, %s404_s0 }
  0x10   :  { %58 = vmatpush.msra.mxu0 %v11_v10  ;;  %80 = vmatpush.msra.mxu1 %v28_v21 }
  0x11   :  { %327 = vmatmul.msk.f32.vlgmr.msra.gmra.mxu0 %vm39_vm0, %v37_v20 }
  0x12   :  { %81 = vmatpush.msra.mxu1 %v27_v22 }
  0x14   :  { %305 = vmatpush.msrb.mxu1 %v26_v46 }
  0x16   :  { %306 = vmatpush.msrb.mxu1 %v25_v47 }
  0x17   :  { %350 = vrot.lane.b32.xlu1 %v349_v23, %s404_s0 }
  0x18   :  { %307 = vmatpush.msrb.mxu1 %v24_v52 }
  0x1a   :  { %308 = vmatpush.msrb.mxu1 %v23_v53 }
  0x1c   :  { %309 = vmatpush.msrb.mxu1 %v22_v54 }
  0x1e   :  { %310 = vmatpush.msrb.mxu1 %v21_v56 }
  0x1f   :  { %355 = vrot.lane.b32.xlu1 %v354_v3, %s404_s0 }
  0x20   :  { %311 = vmatpush.msrb.mxu1 %v20_v60 }
  0x22   :  { %312 = vmatpush.msrb.mxu1 %v19_v12 }
  0x27   :  { %360 = vrot.lane.b32.xlu1 %v359_v7, %s404_s0 }
  0x2f   :  { %370 = vrot.lane.b32.xlu1 %v369_v11, %s404_s0 }
  0x79   :  { %v336_v39 = vpop.permute.xlu1 %335 }
  0x7a   :  { %v337_v40 = vunpack.i.l.bf16 %v336_v39  ;;  %v338_v41 = vunpack.i.h.bf16 %v336_v39 }
  0x7b   :  { %v90_v29 = vpop.permute.xlu0 %89 }
  0x7c   :  { %147 = vmatpush.msra.mxu2 %v337_v40 }
  0x7e   :  { %148 = vmatpush.msra.mxu2 %v338_v41 }
  0x81   :  { %v341_v42 = vpop.permute.xlu1 %340 }
  0x82   :  { %v342_v43 = vunpack.i.l.bf16 %v341_v42  ;;  %v343_v44 = vunpack.i.h.bf16 %v341_v42 }
  0x84   :  { %149 = vmatpush.msra.mxu2 %v342_v43 }
  0x86   :  { %150 = vmatpush.msra.mxu2 %v343_v44 }
  0x89   :  { %v351_v45 = vpop.permute.xlu1 %350 }
  0x8a   :  { %v352_v2 = vunpack.i.l.bf16 %v351_v45  ;;  %v353_v4 = vunpack.i.h.bf16 %v351_v45 }
  0x8e   :  { %v60_v26 = vpop.f32.mrf.mxu0 }
  0x8f   :  { %v61_v27 = vadd.f32 %v394_v25, %v60_v26 }
  0x91   :  { %328 = vmatmul.msk.f32.vlgmr.msra.gmra.mxu1 %vm39_vm0, %v61_v27  ;;  %v356_v48 = vpop.permute.xlu1 %355 }
  0x92   :  { %v357_v50 = vunpack.i.l.bf16 %v356_v48  ;;  %v358_v51 = vunpack.i.h.bf16 %v356_v48 }
  0x94   :  { %206 = vmatpush.msra.mxu3 %v357_v50 }
  0x96   :  { %207 = vmatpush.msra.mxu3 %v358_v51 }
  0x99   :  { %v361_v57 = vpop.permute.xlu1 %360 }
  0x9a   :  { %v362_v58 = vunpack.i.l.bf16 %v361_v57  ;;  %v363_v59 = vunpack.i.h.bf16 %v361_v57 }
  0x9c   :  { %208 = vmatpush.msra.mxu3 %v362_v58 }
  0x9e   :  { %209 = vmatpush.msra.mxu3 %v363_v59 }
  0xa1   :  { %v371_v7 = vpop.permute.xlu1 %370 }
  0xa2   :  { %v372_v10 = vunpack.i.l.bf16 %v371_v7  ;;  %v373_v11 = vunpack.i.h.bf16 %v371_v7 }
 0x10e   :  { %v83_v28 = vpop.f32.mrf.mxu1 }
 0x10f   :  { %v86_v30 = vmul.f32 0.125, %v83_v28 }
 0x111   :  { %v92_v31 = vadd.f32 %v90_v29, %v86_v30 }
 0x113   :  { %v93_v32 = vsel %vm39_vm0, %v92_v31, -inf }
 0x114   :  { %94 = vmax.xlane.f32.xlu0 %v93_v32 }
 0x128   :  { %375 = vrot.lane.b32.xlu0 %v374_v49, %s404_s0 }
 0x130   :  { %380 = vrot.lane.b32.xlu0 %v379_v55, %s404_s0 }
 0x138   :  { %385 = vrot.lane.b32.xlu0 %v384_v62, %s404_s0 }
 0x140   :  { %390 = vrot.lane.b32.xlu0 %v389_v13, %s404_s0 }
 0x187   :  { %v95_v34 = vpop.xlane.xlu0 %94 }
 0x188   :  { %v96_v35 = vsub.f32 %v92_v31, %v95_v34 }
 0x18a   :  { %v97_v36 = vmul.f32 1.442695, %v96_v35 }
 0x18c   :  { %396 = vpow2.f32 %v97_v36 }
 0x192   :  { %v397_v37 = vpop.eup %396 }
 0x193   :  { %v99_v38 = vsel %vm39_vm0, %v397_v37, 0.0 }
 0x194   :  { %100 = vadd.xlane.f32.xlu2 %v99_v38 }
 0x1ac   :  { %345 = vrot.lane.b32.xlu2 %v344_v19, %s404_s0  ;;  %v376_v19 = vpop.permute.xlu0 %375 }
 0x1ad   :  { %v377_v20 = vunpack.i.l.bf16 %v376_v19  ;;  %v378_v21 = vunpack.i.h.bf16 %v376_v19 }
 0x1af   :  { %285 = vmatpush.msrb.mxu0 %v377_v20 }
 0x1b1   :  { %286 = vmatpush.msrb.mxu0 %v378_v21 }
 0x1b4   :  { %365 = vrot.lane.b32.xlu2 %v364_v8, %s404_s0  ;;  %v381_v22 = vpop.permute.xlu0 %380 }
 0x1b5   :  { %v382_v23 = vunpack.i.l.bf16 %v381_v22  ;;  %v383_v30 = vunpack.i.h.bf16 %v381_v22 }
 0x1b7   :  { %287 = vmatpush.msrb.mxu0 %v382_v23 }
 0x1b9   :  { %288 = vmatpush.msrb.mxu0 %v383_v30 }
 0x1bc   :  { %192 = vrot.lane.b32.xlu2 %v394_v25, %s404_s0  ;;  %v386_v31 = vpop.permute.xlu0 %385 }
 0x1bd   :  { %v387_v32 = vunpack.i.l.bf16 %v386_v31  ;;  %v388_v33 = vunpack.i.h.bf16 %v386_v31 }
 0x1bf   :  { %289 = vmatpush.msrb.mxu0 %v387_v32 }
 0x1c1   :  { %290 = vmatpush.msrb.mxu0 %v388_v33 }
 0x1c4   :  { %v391_v34 = vpop.permute.xlu0 %390 }
 0x1c5   :  { %v393_v35 = vunpack.i.h.bf16 %v391_v34  ;;  %v392_v36 = vunpack.i.l.bf16 %v391_v34 }
 0x1c7   :  { %291 = vmatpush.msrb.mxu0 %v392_v36 }
 0x1c9   :  { %292 = vmatpush.msrb.mxu0 %v393_v35 }
 0x207   :  { %v101_v61 = vpop.xlane.xlu2 %100 }
 0x208   :  { %398 = vrcp.f32 %v101_v61 }
 0x20e   :  { %v399_v3 = vpop.eup %398 }
 0x20f   :  { %v346_v63 = vpop.permute.xlu2 %345  ;;  %v103_v5 = vmul.f32 %v399_v3, %v397_v37 }
 0x210   :  { %v347_v0 = vunpack.i.l.bf16 %v346_v63  ;;  %v348_v1 = vunpack.i.h.bf16 %v346_v63 }
 0x212   :  { %151 = vmatpush.msra.mxu2 %v347_v0 }
 0x214   :  { %152 = vmatpush.msra.mxu2 %v348_v1 }
 0x216   :  { %153 = vmatpush.msra.mxu2 %v352_v2 }
 0x217   :  { %v366_v6 = vpop.permute.xlu2 %365 }
 0x218   :  { %154 = vmatpush.msra.mxu2 %v353_v4  ;;  %v367_v8 = vunpack.i.l.bf16 %v366_v6  ;;  %v368_v9 = vunpack.i.h.bf16 %v366_v6 }
 0x219   :  { %329 = vmatmul.msk.f32.vlgmr.msra.gmra.mxu2 %vm39_vm0, %v103_v5 }
 0x21a   :  { %210 = vmatpush.msra.mxu3 %v367_v8 }
 0x21c   :  { %211 = vmatpush.msra.mxu3 %v368_v9 }
 0x21e   :  { %212 = vmatpush.msra.mxu3 %v372_v10 }
 0x21f   :  { %v193_v15 = vpop.permute.xlu2 %192 }
 0x220   :  { %213 = vmatpush.msra.mxu3 %v373_v11 }
 0x29c   :  { %v156_v14 = vpop.f32.mrf.mxu2 }
 0x29d   :  { %330 = vmatmul.msk.f32.vlgmr.msra.gmra.mxu3 %vm39_vm0, %v156_v14  ;;  %332 = vmatmul.msk.f32.vlgmr.msrb.gmra.mxu1 %vm39_vm0, %v156_v14 }
 0x31a   :  { %v314_v49 = vpop.f32.mrf.mxu1 }
 0x320   :  { %v215_v16 = vpop.f32.mrf.mxu3 }
 0x321   :  { %v216_v17 = vadd.f32 %v215_v16, %v193_v15 }
 0x323   :  { %v218_v18 = vsel %vm39_vm0, %v216_v17, -inf }
 0x324   :  { %219 = vmax.xlane.f32.xlu1 %v218_v18 }
 0x397   :  { %v220_v25 = vpop.xlane.xlu1 %219 }
 0x398   :  { %v221_v26 = vsub.f32 %v216_v17, %v220_v25 }
 0x39a   :  { %v222_v27 = vmul.f32 1.442695, %v221_v26 }
 0x39c   :  { %400 = vpow2.f32 %v222_v27 }
 0x3a2   :  { %v401_v28 = vpop.eup %400 }
 0x3a3   :  { %v224_v29 = vsel %vm39_vm0, %v401_v28, 0.0 }
 0x3a4   :  { %225 = vadd.xlane.f32.xlu2 %v224_v29 }
 0x417   :  { %v226_v37 = vpop.xlane.xlu2 %225 }
 0x418   :  { %402 = vrcp.f32 %v226_v37  ;;  %v238_v41 = vand.u32 2147483648, %v226_v37  ;;  %v236_v43 = vand.u32 2147483647, %v226_v37  ;;  %vm232_vm2 = vweird.f32 %v226_v37 }
 0x41a   :  { %v239_v45 = vor.u32 1.1754944e-38, %v238_v41  ;;  %vm237_vm4 = vcmp.eq.f32.partialorder %v236_v43, 8.507059e+37 }
 0x41e   :  { %v403_v38 = vpop.eup %402 }
 0x41f   :  { %v228_v39 = vmul.f32 %v403_v38, %v226_v37  ;;  %vm233_vm1 = vweird.f32 %v403_v38 }
 0x420   :  { %vm234_vm3 = vmor %vm232_vm2, %vm233_vm1 }
 0x421   :  { %v229_v40 = vsub.f32 1.0, %v228_v39 }
 0x423   :  { %v230_v42 = vmul.f32 %v403_v38, %v229_v40 }
 0x425   :  { %v231_v44 = vadd.f32 %v403_v38, %v230_v42 }
 0x427   :  { %v235_v46 = vsel %vm234_vm3, %v403_v38, %v231_v44 }
 0x428   :  { %v240_v47 = vsel %vm237_vm4, %v239_v45, %v235_v46 }
 0x429   :  { %v241_v48 = vmul.f32 %v401_v28, %v240_v47 }
 0x42b   :  { %318 = vrot.lane.b32.xlu2 %v241_v48, %s404_s0  ;;  %331 = vmatmul.msk.f32.vlgmr.msrb.gmra.mxu0 %vm39_vm0, %v241_v48 }
 0x485   :  { %v319_v53 = vpop.permute.xlu2 %318 }
 0x4a8   :  { %v294_v50 = vpop.f32.mrf.mxu0 }
 0x4a9   :  { %v315_v51 = vadd.f32 %v314_v49, %v294_v50 }
 0x4ab   :  { %v317_v52 = vadd.f32 %v487_v24, %v315_v51 }
 0x4ad   :  { %v321_v54 = vsel %vm39_vm0, %v317_v52, %v319_v53 }
 0x4ae   :  { %322 = vst [vmem:[%s548_s2] sm:$0xff] %v321_v54 }

</bundles_post_ra>
